<compile_context>
chip_gen: v7x
topology: tpu7x:2x2x1
jax: 0.10.0
libtpu: 0.0.40
codegen_flags: <defaults>
</compile_context>

<pallas_src>
import numpy as np
import jax
import jax.numpy as jnp
from jax import lax
from jax.experimental import pallas as pl
from jax.experimental.pallas import tpu as pltpu

# ---------------- model configuration (small, consistent with the module) -------------
B = 2          # batch
N = 16         # num_nodes
T = 8          # num_timesteps_input
C_IN = 4       # in_channels
C_OUT = 8      # TimeBlock out_channels
SPATIAL = 4    # spatial_channels (== C_IN -> residual-add branch in STGATBlock)
NHEADS = 4     # attention heads
F_IN = C_OUT * T        # GAT in_features = out_channels * num_timesteps_input (64)
F_OUT = SPATIAL         # GAT out_features (4)
HF = NHEADS * F_OUT     # concat width (16)
NN = NHEADS * N         # lane-batched attention width (64)
ALPHA = 0.2             # LeakyReLU slope
BN_EPS = 1e-5
KT = 3                  # temporal kernel size


# ============================== fused STGATBlock kernel ===============================
def make_stgat_kernel(bper):
    """Build the fused kernel processing `bper` batch elements (bper*N rows) per step."""

    def kernel(x_ref, adj_ref, tb_ref, gat_ref, a2_ref, mask_ref, bn_ref, o_ref):
        # x_ref   : (bper*N, T*C_IN)        flattened input rows (batch folded into rows)
        # adj_ref : (N, NN)                 A_hat tiled NHEADS times along lanes
        # tb_ref  : (T*C_IN+1, 2*F_IN)      [Toeplitz(w1+w3) | Toeplitz(w2)] + bias row
        # gat_ref : (F_IN+1, 2*HF+NN)       [W_all | Wr_all | (W^T a1) replicated N] + bias
        # a2_ref  : (NHEADS, F_IN+1)        rows: (a2 W)_h | b2_h
        # mask_ref: (NN, HF)                0/1 block-diagonal head mask
        # bn_ref  : (bper*N, 2*HF)          pre-broadcast BatchNorm scale | shift
        # o_ref   : (bper*N, HF)            lane-dense output slab
        x = x_ref[...]
        adj = adj_ref[...]
        tb = tb_ref[...]
        gat = gat_ref[...]
        a2 = a2_ref[...]
        mask = mask_ref[...]
        bn = bn_ref[...]

        # ---- TimeBlock: ONE GEMM (bper*N, 32) x (32, 128); conv1+conv3 pre-folded ----
        y = jnp.dot(x, tb[:T * C_IN, :], preferred_element_type=jnp.float32) + tb[T * C_IN:, :]
        # t = relu((conv1+conv3)(X) + sigmoid(conv2(X))), already flattened to (rows, F_IN)
        t_flat = jnp.maximum(y[:, :F_IN] + jax.nn.sigmoid(y[:, F_IN:]), 0.0)

        # ---- GAT projections: ONE GEMM (bper*N, 64) x (64, 96) ----
        z = jnp.dot(t_flat, gat[:F_IN, :], preferred_element_type=jnp.float32) + gat[F_IN:, :]
        fts_all = z[:, :HF]            # seq_transformation, head-blocked columns
        res_all = z[:, HF:2 * HF]      # proj_residual (with its bias)
        f1_rep = z[:, 2 * HF:]         # f_1 scores, pre-replicated N times per head (rows, NN)

        # f_2 scores in (head, node-row) orientation: one tiny GEMM per grid step
        f2_all = lax.dot_general(a2[:, :F_IN], t_flat, (((1,), (1,)), ((), ())),
                                 preferred_element_type=jnp.float32) + a2[:, F_IN:]

        outs = []
        for bb in range(bper):          # static; bper is 1 (v7x) or B (v5e/v6e)
            rows = slice(bb * N, (bb + 1) * N)

            # logits[i, h*N+j] = f1_h[i] + f2_h[j]  -- all heads in one (N, NN) slab
            f2_row = jnp.concatenate(
                [f2_all[h:h + 1, bb * N:(bb + 1) * N] for h in range(NHEADS)], axis=1)
            logits = f1_rep[rows, :] + f2_row
            s = jnp.where(logits > 0, logits, ALPHA * logits) + adj
            # global row max is a valid (per-segment-constant) softmax stabilizer
            m = jnp.max(s, axis=1, keepdims=True)
            e = jnp.exp(s - m)                                             # (N, NN)

            # ONE matmul gives both AV (head-block-diagonal fts) and per-head denominators
            fts_b = fts_all[rows, :]
            rhs = jnp.concatenate(
                [jnp.concatenate([fts_b] * NHEADS, axis=0) * mask, mask], axis=1)  # (NN, 2HF)
            av = jnp.dot(e, rhs, preferred_element_type=jnp.float32)      # (N, 2*HF)
            den = av[:, HF:]
            r = pl.reciprocal(den, approx=True)        # EUP path
            r = r * (2.0 - den * r)                     # one Newton step -> f32-accurate
            ret = av[:, :HF] * r + res_all[rows, :]
            ret = jnp.where(ret > 0, ret, jnp.exp(jnp.minimum(ret, 0.0)) - 1.0)   # ELU

            # STGAT tail: residual add (last NHEADS timesteps), ReLU, BatchNorm2d(eval)
            out_b = jnp.maximum(ret + x[rows, (T - NHEADS) * C_IN:], 0.0)
            bn_b = bn[rows, :]
            outs.append(out_b * bn_b[:, :HF] + bn_b[:, HF:])

        out = outs[0] if bper == 1 else jnp.concatenate(outs, axis=0)
        o_ref[...] = out.astype(o_ref.dtype)

    return kernel


def _batches_per_step():
    # v7x has 2 TensorCores/chip: keep grid=(B,) "parallel" so each core takes one batch
    # element.  Single-TC chips (v5e/v6e): fold the whole batch into one grid step.
    try:
        kind = jax.devices()[0].device_kind.lower()
        if "v7" in kind or "tpu7" in kind:
            return 1
    except Exception:
        pass
    return B


def stgat_block_forward(X, A_hat, packed):
    bper = _batches_per_step()
    x_flat = X.reshape(B * N, T * C_IN)              # contiguous -> free metadata reshape
    adj_rep = jnp.tile(A_hat, (1, NHEADS))           # (N, NN), shared by every grid step
    out = pl.pallas_call(
        make_stgat_kernel(bper),
        out_shape=jax.ShapeDtypeStruct((B * N, HF), jnp.float32),
        grid=(B // bper,),
        in_specs=[
            pl.BlockSpec((bper * N, T * C_IN), lambda b: (b, 0)),
            pl.BlockSpec((N, NN), lambda b: (0, 0)),
            pl.BlockSpec((T * C_IN + 1, 2 * F_IN), lambda b: (0, 0)),
            pl.BlockSpec((F_IN + 1, 2 * HF + NN), lambda b: (0, 0)),
            pl.BlockSpec((NHEADS, F_IN + 1), lambda b: (0, 0)),
            pl.BlockSpec((NN, HF), lambda b: (0, 0)),
            pl.BlockSpec((bper * N, 2 * HF), lambda b: (b, 0)),
        ],
        out_specs=pl.BlockSpec((bper * N, HF), lambda b: (b, 0)),
        compiler_params=pltpu.CompilerParams(dimension_semantics=("parallel",)),
    )(x_flat, adj_rep, packed["tb"], packed["gat"], packed["a2"],
      packed["mask"], packed["bn"])
    # cat over heads then view(B, N, nheads, spatial_channels)
    return out.reshape(B, N, NHEADS, SPATIAL)


stgat_block_forward_jit = jax.jit(stgat_block_forward)


# =============================== parameter packing =====================================
def pack_params(p):
    def toeplitz(w):
        # out[t_out] = sum_k X[t_out + k - 1] @ w[k]  (zero-padded time axis)
        w = np.asarray(w, np.float32)
        Wt = np.zeros((T * C_IN, T * C_OUT), np.float32)
        for k in range(KT):
            for t_out in range(T):
                t_in = t_out + k - 1
                if 0 <= t_in < T:
                    Wt[t_in * C_IN:(t_in + 1) * C_IN,
                       t_out * C_OUT:(t_out + 1) * C_OUT] += w[k]
        return Wt

    # --- TimeBlock: conv1+conv3 folded (block A), conv2 (block B); bias in last row ---
    tb_pack = np.zeros((T * C_IN + 1, 2 * F_IN), np.float32)
    tb_pack[:T * C_IN, :F_IN] = toeplitz(p["tb_w1"]) + toeplitz(p["tb_w3"])
    tb_pack[:T * C_IN, F_IN:] = toeplitz(p["tb_w2"])
    tb_pack[T * C_IN, :F_IN] = np.tile(np.asarray(p["tb_b1"]).reshape(-1)
                                       + np.asarray(p["tb_b3"]).reshape(-1), T)
    tb_pack[T * C_IN, F_IN:] = np.tile(np.asarray(p["tb_b2"]).reshape(-1), T)

    # --- GAT: [seq_transformation | proj_residual | W^T a1 replicated N per head] ---
    gat_pack = np.zeros((F_IN + 1, 2 * HF + NN), np.float32)
    a2_pack = np.zeros((NHEADS, F_IN + 1), np.float32)
    for h in range(NHEADS):
        Wh = np.asarray(p["gat_W"][h])              # (F_OUT, F_IN)
        Wrh = np.asarray(p["gat_Wr"][h])            # (F_OUT, F_IN)
        a1h = np.asarray(p["gat_a1"][h, 0])         # (F_OUT,)
        a2h = np.asarray(p["gat_a2"][h, 0])         # (F_OUT,)
        gat_pack[:F_IN, h * F_OUT:(h + 1) * F_OUT] = Wh.T                       # no bias
        gat_pack[:F_IN, HF + h * F_OUT:HF + (h + 1) * F_OUT] = Wrh.T
        gat_pack[F_IN, HF + h * F_OUT:HF + (h + 1) * F_OUT] = np.asarray(p["gat_br"][h, 0])
        f1w = Wh.T @ a1h                             # f_1 folded through W
        gat_pack[:F_IN, 2 * HF + h * N:2 * HF + (h + 1) * N] = f1w[:, None]     # replicated
        gat_pack[F_IN, 2 * HF + h * N:2 * HF + (h + 1) * N] = float(p["gat_b1"][h, 0, 0])
        a2_pack[h, :F_IN] = a2h @ Wh                 # f_2 folded through W
        a2_pack[h, F_IN] = float(p["gat_b2"][h, 0, 0])

    # 0/1 block-diagonal head mask: shared by the AV matmul RHS and the denominator columns
    head_mask = (np.arange(NN)[:, None] // N == np.arange(HF)[None, :] // F_OUT
                 ).astype(np.float32)

    # BatchNorm2d(eval): per-node scale/shift pre-broadcast to (B*N, 2*HF)
    scale = np.asarray(p["bn_scale"]).reshape(N)
    shift = np.asarray(p["bn_shift"]).reshape(N)
    bn_pack = np.zeros((B * N, 2 * HF), np.float32)
    bn_pack[:, :HF] = np.tile(scale, B)[:, None]
    bn_pack[:, HF:] = np.tile(shift, B)[:, None]

    return {"tb": jnp.asarray(tb_pack), "gat": jnp.asarray(gat_pack),
            "a2": jnp.asarray(a2_pack), "mask": jnp.asarray(head_mask),
            "bn": jnp.asarray(bn_pack)}


# ================================ pure-JAX reference ==================================
def reference_forward(X, A_hat, p):
    Xp = jnp.pad(X, ((0, 0), (0, 0), (1, 1), (0, 0)))

    def conv(w, b):
        acc = 0.0
        for k in range(KT):
            acc = acc + jnp.einsum("bntc,co->bnto", Xp[:, :, k:k + T, :], w[k])
        return acc + b.reshape(1, 1, 1, C_OUT)

    c1 = conv(p["tb_w1"], p["tb_b1"])
    c2 = conv(p["tb_w2"], p["tb_b2"])
    c3 = conv(p["tb_w3"], p["tb_b3"])
    t = jax.nn.relu(c1 + jax.nn.sigmoid(c2) + c3)              # (B, N, T, C_OUT)
    tf = t.reshape(B, N, F_IN)

    heads = []
    for h in range(NHEADS):
        fts = jnp.einsum("bnf,of->bno", tf, p["gat_W"][h])
        f1 = jnp.einsum("bno,o->bn", fts, p["gat_a1"][h, 0]) + p["gat_b1"][h, 0, 0]
        f2 = jnp.einsum("bno,o->bn", fts, p["gat_a2"][h, 0]) + p["gat_b2"][h, 0, 0]
        logits = f1[:, :, None] + f2[:, None, :]
        lrelu = jnp.where(logits > 0, logits, ALPHA * logits)
        coefs = jax.nn.softmax(lrelu + A_hat[None], axis=-1)
        ret = jnp.einsum("bij,bjo->bio", coefs, fts)
        ret = ret + jnp.einsum("bnf,of->bno", tf, p["gat_Wr"][h]) + p["gat_br"][h, 0]
        heads.append(jnp.where(ret > 0, ret, jnp.exp(ret) - 1.0))
    t2 = jnp.stack(heads, axis=2)                              # (B, N, NHEADS, F_OUT)

    t3 = jax.nn.relu(t2 + X[:, :, T - NHEADS:, :])
    scale = p["bn_scale"].reshape(1, N, 1, 1)
    shift = p["bn_shift"].reshape(1, N, 1, 1)
    return t3 * scale + shift


# ================================== parameter init ====================================
def init_params(key):
    ks = jax.random.split(key, 13)

    def nrm(k, shape, scale):
        return (scale * jax.random.normal(k, shape)).astype(jnp.float32)

    p = {}
    # TimeBlock: 3x Conv2d(C_IN, C_OUT, (1, 3)) with bias
    p["tb_w1"] = nrm(ks[0], (KT, C_IN, C_OUT), 0.3)
    p["tb_w2"] = nrm(ks[1], (KT, C_IN, C_OUT), 0.3)
    p["tb_w3"] = nrm(ks[2], (KT, C_IN, C_OUT), 0.3)
    p["tb_b1"] = nrm(ks[3], (1, C_OUT), 0.1)
    p["tb_b2"] = nrm(ks[4], (1, C_OUT), 0.1)
    p["tb_b3"] = nrm(ks[5], (1, C_OUT), 0.1)
    # GAT heads, stacked along a leading head axis
    p["gat_W"] = nrm(ks[6], (NHEADS, F_OUT, F_IN), 0.1)    # seq_transformation (no bias)
    p["gat_a1"] = nrm(ks[7], (NHEADS, 1, F_OUT), 0.3)      # f_1 weight
    p["gat_b1"] = nrm(ks[8], (NHEADS, 1, 1), 0.1)          # f_1 bias
    p["gat_a2"] = nrm(ks[9], (NHEADS, 1, F_OUT), 0.3)      # f_2 weight
    p["gat_b2"] = nrm(ks[10], (NHEADS, 1, 1), 0.1)         # f_2 bias
    p["gat_Wr"] = nrm(ks[11], (NHEADS, F_OUT, F_IN), 0.1)  # proj_residual weight
    p["gat_br"] = nrm(ks[12], (NHEADS, 1, F_OUT), 0.1)     # proj_residual bias
    # BatchNorm2d(num_nodes), eval mode, PyTorch default init
    gamma = jnp.ones((N,), jnp.float32)
    beta = jnp.zeros((N,), jnp.float32)
    rmean = jnp.zeros((N,), jnp.float32)
    rvar = jnp.ones((N,), jnp.float32)
    scale = gamma / jnp.sqrt(rvar + BN_EPS)
    p["bn_scale"] = scale.reshape(N, 1)
    p["bn_shift"] = (beta - rmean * scale).reshape(N, 1)
    return p


# ====================================== main ==========================================
if __name__ == "__main__":
    key = jax.random.PRNGKey(0)
    kx, ka, kp = jax.random.split(key, 3)

    X = jax.random.normal(kx, (B, N, T, C_IN), dtype=jnp.float32)
    A_hat = 0.5 * jax.random.normal(ka, (N, N), dtype=jnp.float32)
    params = init_params(kp)
    packed = pack_params(params)

    out = stgat_block_forward_jit(X, A_hat, packed)
    out = jax.block_until_ready(out)
    assert out.shape == (B, N, NHEADS, SPATIAL), out.shape

    ref = jax.block_until_ready(reference_forward(X, A_hat, params))
    if not bool(jnp.allclose(out, ref, atol=1e-4, rtol=1e-4)):
        max_err = float(jnp.max(jnp.abs(out - ref)))
        raise AssertionError(f"Pallas kernel mismatch vs JAX reference, max err={max_err}")

    print("KERNEL_OK")
</pallas_src>

<mosaic_0001>
module attributes {stable_mosaic.version = 11 : i64} {
  func.func @kernel(%arg0: i32, %arg1: memref<32x32xf32, #tpu.memory_space<vmem>>, %arg2: memref<16x64xf32, #tpu.memory_space<vmem>>, %arg3: memref<33x128xf32, #tpu.memory_space<vmem>>, %arg4: memref<65x96xf32, #tpu.memory_space<vmem>>, %arg5: memref<4x65xf32, #tpu.memory_space<vmem>>, %arg6: memref<64x16xf32, #tpu.memory_space<vmem>>, %arg7: memref<32x32xf32, #tpu.memory_space<vmem>>, %arg8: memref<32x16xf32, #tpu.memory_space<vmem>>) attributes {dimension_semantics = [#tpu.dimension_semantics<parallel>], iteration_bounds = array<i64: 1>, scalar_prefetch = 0 : i64, scratch_operands = 0 : i64, tpu.core_type = #tpu.core_type<tc>, window_params = [{transform_indices = @transform_0, window_bounds = array<i64: 32, 32>}, {pipeline_mode = #tpu.pipeline_mode<synchronous>, transform_indices = @transform_1, window_bounds = array<i64: 16, 64>}, {pipeline_mode = #tpu.pipeline_mode<synchronous>, transform_indices = @transform_2, window_bounds = array<i64: 33, 128>}, {pipeline_mode = #tpu.pipeline_mode<synchronous>, transform_indices = @transform_3, window_bounds = array<i64: 65, 96>}, {pipeline_mode = #tpu.pipeline_mode<synchronous>, transform_indices = @transform_4, window_bounds = array<i64: 4, 65>}, {pipeline_mode = #tpu.pipeline_mode<synchronous>, transform_indices = @transform_5, window_bounds = array<i64: 64, 16>}, {transform_indices = @transform_6, window_bounds = array<i64: 32, 32>}, {transform_indices = @transform_7, window_bounds = array<i64: 32, 16>}]} {
    %c0 = arith.constant 0 : index
    %c0_0 = arith.constant 0 : index
    %0 = vector.load %arg1[%c0, %c0_0] : memref<32x32xf32, #tpu.memory_space<vmem>>, vector<32x32xf32>
    %c0_1 = arith.constant 0 : index
    %c0_2 = arith.constant 0 : index
    %1 = vector.load %arg2[%c0_1, %c0_2] : memref<16x64xf32, #tpu.memory_space<vmem>>, vector<16x64xf32>
    %c0_3 = arith.constant 0 : index
    %c0_4 = arith.constant 0 : index
    %2 = vector.load %arg3[%c0_3, %c0_4] : memref<33x128xf32, #tpu.memory_space<vmem>>, vector<33x128xf32>
    %c0_5 = arith.constant 0 : index
    %c0_6 = arith.constant 0 : index
    %3 = vector.load %arg4[%c0_5, %c0_6] : memref<65x96xf32, #tpu.memory_space<vmem>>, vector<65x96xf32>
    %c0_7 = arith.constant 0 : index
    %c0_8 = arith.constant 0 : index
    %4 = vector.load %arg5[%c0_7, %c0_8] : memref<4x65xf32, #tpu.memory_space<vmem>>, vector<4x65xf32>
    %c0_9 = arith.constant 0 : index
    %c0_10 = arith.constant 0 : index
    %5 = vector.load %arg6[%c0_9, %c0_10] : memref<64x16xf32, #tpu.memory_space<vmem>>, vector<64x16xf32>
    %c0_11 = arith.constant 0 : index
    %c0_12 = arith.constant 0 : index
    %6 = vector.load %arg7[%c0_11, %c0_12] : memref<32x32xf32, #tpu.memory_space<vmem>>, vector<32x32xf32>
    %7 = vector.extract_strided_slice %2 {offsets = [0, 0], sizes = [32, 128], strides = [1, 1]} : vector<33x128xf32> to vector<32x128xf32>
    %cst = arith.constant dense<0.000000e+00> : vector<32x128xf32>
    %8 = tpu.matmul %0, %7, %cst {dimension_numbers = #tpu.dot_dimension_numbers<[1], [0], [0], [1], [0, 0, 1, 1], [], []>} : vector<32x32xf32>, vector<32x128xf32>, vector<32x128xf32> -> vector<32x128xf32>
    %9 = vector.extract_strided_slice %2 {offsets = [32, 0], sizes = [1, 128], strides = [1, 1]} : vector<33x128xf32> to vector<1x128xf32>
    %10 = vector.broadcast %9 : vector<1x128xf32> to vector<32x128xf32>
    %11 = arith.addf %8, %10 : vector<32x128xf32>
    %12 = vector.extract_strided_slice %11 {offsets = [0, 0], sizes = [32, 64], strides = [1, 1]} : vector<32x128xf32> to vector<32x64xf32>
    %13 = vector.extract_strided_slice %11 {offsets = [0, 64], sizes = [32, 64], strides = [1, 1]} : vector<32x128xf32> to vector<32x64xf32>
    %14 = arith.negf %13 : vector<32x64xf32>
    %15 = math.exp %14 : vector<32x64xf32>
    %cst_13 = arith.constant 1.000000e+00 : f32
    %16 = vector.broadcast %cst_13 : f32 to vector<32x64xf32>
    %17 = arith.addf %16, %15 : vector<32x64xf32>
    %18 = arith.divf %16, %17 : vector<32x64xf32>
    %19 = arith.addf %12, %18 : vector<32x64xf32>
    %cst_14 = arith.constant 0.000000e+00 : f32
    %20 = vector.broadcast %cst_14 : f32 to vector<32x64xf32>
    %21 = arith.maximumf %19, %20 : vector<32x64xf32>
    %22 = vector.extract_strided_slice %3 {offsets = [0, 0], sizes = [64, 96], strides = [1, 1]} : vector<65x96xf32> to vector<64x96xf32>
    %cst_15 = arith.constant dense<0.000000e+00> : vector<32x96xf32>
    %23 = tpu.matmul %21, %22, %cst_15 {dimension_numbers = #tpu.dot_dimension_numbers<[1], [0], [0], [1], [0, 0, 1, 1], [], []>} : vector<32x64xf32>, vector<64x96xf32>, vector<32x96xf32> -> vector<32x96xf32>
    %24 = vector.extract_strided_slice %3 {offsets = [64, 0], sizes = [1, 96], strides = [1, 1]} : vector<65x96xf32> to vector<1x96xf32>
    %25 = vector.broadcast %24 : vector<1x96xf32> to vector<32x96xf32>
    %26 = arith.addf %23, %25 : vector<32x96xf32>
    %27 = vector.extract_strided_slice %26 {offsets = [0, 0], sizes = [32, 16], strides = [1, 1]} : vector<32x96xf32> to vector<32x16xf32>
    %28 = vector.extract_strided_slice %26 {offsets = [0, 16], sizes = [32, 16], strides = [1, 1]} : vector<32x96xf32> to vector<32x16xf32>
    %29 = vector.extract_strided_slice %26 {offsets = [0, 32], sizes = [32, 64], strides = [1, 1]} : vector<32x96xf32> to vector<32x64xf32>
    %30 = vector.extract_strided_slice %4 {offsets = [0, 0], sizes = [4, 64], strides = [1, 1]} : vector<4x65xf32> to vector<4x64xf32>
    %cst_16 = arith.constant dense<0.000000e+00> : vector<4x32xf32>
    %31 = tpu.matmul %30, %21, %cst_16 {dimension_numbers = #tpu.dot_dimension_numbers<[1], [1], [0], [0], [0, 0, 1, 0], [], []>} : vector<4x64xf32>, vector<32x64xf32>, vector<4x32xf32> -> vector<4x32xf32>
    %32 = vector.extract_strided_slice %4 {offsets = [0, 64], sizes = [4, 1], strides = [1, 1]} : vector<4x65xf32> to vector<4x1xf32>
    %33 = vector.broadcast %32 : vector<4x1xf32> to vector<4x32xf32>
    %34 = arith.addf %31, %33 : vector<4x32xf32>
    %35 = vector.extract_strided_slice %34 {offsets = [0, 0], sizes = [1, 16], strides = [1, 1]} : vector<4x32xf32> to vector<1x16xf32>
    %36 = vector.extract_strided_slice %34 {offsets = [1, 0], sizes = [1, 16], strides = [1, 1]} : vector<4x32xf32> to vector<1x16xf32>
    %37 = vector.extract_strided_slice %34 {offsets = [2, 0], sizes = [1, 16], strides = [1, 1]} : vector<4x32xf32> to vector<1x16xf32>
    %38 = vector.extract_strided_slice %34 {offsets = [3, 0], sizes = [1, 16], strides = [1, 1]} : vector<4x32xf32> to vector<1x16xf32>
    %39 = tpu.concatenate %35, %36, %37, %38 in 1 : vector<1x16xf32>, vector<1x16xf32>, vector<1x16xf32>, vector<1x16xf32> -> vector<1x64xf32>
    %40 = vector.extract_strided_slice %29 {offsets = [0, 0], sizes = [16, 64], strides = [1, 1]} : vector<32x64xf32> to vector<16x64xf32>
    %41 = vector.broadcast %39 : vector<1x64xf32> to vector<16x64xf32>
    %42 = arith.addf %40, %41 : vector<16x64xf32>
    %cst_17 = arith.constant 0.000000e+00 : f32
    %43 = vector.broadcast %cst_17 : f32 to vector<16x64xf32>
    %44 = arith.cmpf ogt, %42, %43 : vector<16x64xf32>
    %cst_18 = arith.constant 2.000000e-01 : f32
    %45 = vector.broadcast %cst_18 : f32 to vector<16x64xf32>
    %46 = arith.mulf %45, %42 : vector<16x64xf32>
    %47 = arith.select %44, %42, %46 : vector<16x64xi1>, vector<16x64xf32>
    %48 = arith.addf %47, %1 : vector<16x64xf32>
    %cst_19 = arith.constant dense<0xFF800000> : vector<16xf32>
    %49 = vector.multi_reduction <maximumf>, %48, %cst_19 [1] : vector<16x64xf32> to vector<16xf32>
    %50 = vector.shape_cast %49 : vector<16xf32> to vector<16x1xf32>
    %51 = vector.broadcast %50 : vector<16x1xf32> to vector<16x64xf32>
    %52 = arith.subf %48, %51 : vector<16x64xf32>
    %53 = math.exp %52 : vector<16x64xf32>
    %54 = vector.extract_strided_slice %27 {offsets = [0, 0], sizes = [16, 16], strides = [1, 1]} : vector<32x16xf32> to vector<16x16xf32>
    %55 = tpu.concatenate %54, %54, %54, %54 in 0 : vector<16x16xf32>, vector<16x16xf32>, vector<16x16xf32>, vector<16x16xf32> -> vector<64x16xf32>
    %56 = arith.mulf %55, %5 : vector<64x16xf32>
    %57 = tpu.concatenate %56, %5 in 1 : vector<64x16xf32>, vector<64x16xf32> -> vector<64x32xf32>
    %cst_20 = arith.constant dense<0.000000e+00> : vector<16x32xf32>
    %58 = tpu.matmul %53, %57, %cst_20 {dimension_numbers = #tpu.dot_dimension_numbers<[1], [0], [0], [1], [0, 0, 1, 1], [], []>} : vector<16x64xf32>, vector<64x32xf32>, vector<16x32xf32> -> vector<16x32xf32>
    %59 = vector.extract_strided_slice %58 {offsets = [0, 16], sizes = [16, 16], strides = [1, 1]} : vector<16x32xf32> to vector<16x16xf32>
    %60 = tpu.reciprocal %59 {approx = true} : vector<16x16xf32> -> vector<16x16xf32>
    %61 = arith.mulf %59, %60 : vector<16x16xf32>
    %cst_21 = arith.constant 2.000000e+00 : f32
    %62 = vector.broadcast %cst_21 : f32 to vector<16x16xf32>
    %63 = arith.subf %62, %61 : vector<16x16xf32>
    %64 = arith.mulf %60, %63 : vector<16x16xf32>
    %65 = vector.extract_strided_slice %58 {offsets = [0, 0], sizes = [16, 16], strides = [1, 1]} : vector<16x32xf32> to vector<16x16xf32>
    %66 = arith.mulf %65, %64 : vector<16x16xf32>
    %67 = vector.extract_strided_slice %28 {offsets = [0, 0], sizes = [16, 16], strides = [1, 1]} : vector<32x16xf32> to vector<16x16xf32>
    %68 = arith.addf %66, %67 : vector<16x16xf32>
    %cst_22 = arith.constant 0.000000e+00 : f32
    %69 = vector.broadcast %cst_22 : f32 to vector<16x16xf32>
    %70 = arith.cmpf ogt, %68, %69 : vector<16x16xf32>
    %cst_23 = arith.constant 0.000000e+00 : f32
    %71 = vector.broadcast %cst_23 : f32 to vector<16x16xf32>
    %72 = arith.minimumf %68, %71 : vector<16x16xf32>
    %73 = math.exp %72 : vector<16x16xf32>
    %cst_24 = arith.constant 1.000000e+00 : f32
    %74 = vector.broadcast %cst_24 : f32 to vector<16x16xf32>
    %75 = arith.subf %73, %74 : vector<16x16xf32>
    %76 = arith.select %70, %68, %75 : vector<16x16xi1>, vector<16x16xf32>
    %77 = vector.extract_strided_slice %0 {offsets = [0, 16], sizes = [16, 16], strides = [1, 1]} : vector<32x32xf32> to vector<16x16xf32>
    %78 = arith.addf %76, %77 : vector<16x16xf32>
    %cst_25 = arith.constant 0.000000e+00 : f32
    %79 = vector.broadcast %cst_25 : f32 to vector<16x16xf32>
    %80 = arith.maximumf %78, %79 : vector<16x16xf32>
    %81 = vector.extract_strided_slice %6 {offsets = [0, 0], sizes = [16, 32], strides = [1, 1]} : vector<32x32xf32> to vector<16x32xf32>
    %82 = vector.extract_strided_slice %81 {offsets = [0, 0], sizes = [16, 16], strides = [1, 1]} : vector<16x32xf32> to vector<16x16xf32>
    %83 = arith.mulf %80, %82 : vector<16x16xf32>
    %84 = vector.extract_strided_slice %81 {offsets = [0, 16], sizes = [16, 16], strides = [1, 1]} : vector<16x32xf32> to vector<16x16xf32>
    %85 = arith.addf %83, %84 : vector<16x16xf32>
    %86 = vector.extract_strided_slice %34 {offsets = [0, 16], sizes = [1, 16], strides = [1, 1]} : vector<4x32xf32> to vector<1x16xf32>
    %87 = vector.extract_strided_slice %34 {offsets = [1, 16], sizes = [1, 16], strides = [1, 1]} : vector<4x32xf32> to vector<1x16xf32>
    %88 = vector.extract_strided_slice %34 {offsets = [2, 16], sizes = [1, 16], strides = [1, 1]} : vector<4x32xf32> to vector<1x16xf32>
    %89 = vector.extract_strided_slice %34 {offsets = [3, 16], sizes = [1, 16], strides = [1, 1]} : vector<4x32xf32> to vector<1x16xf32>
    %90 = tpu.concatenate %86, %87, %88, %89 in 1 : vector<1x16xf32>, vector<1x16xf32>, vector<1x16xf32>, vector<1x16xf32> -> vector<1x64xf32>
    %91 = vector.extract_strided_slice %29 {offsets = [16, 0], sizes = [16, 64], strides = [1, 1]} : vector<32x64xf32> to vector<16x64xf32>
    %92 = vector.broadcast %90 : vector<1x64xf32> to vector<16x64xf32>
    %93 = arith.addf %91, %92 : vector<16x64xf32>
    %cst_26 = arith.constant 0.000000e+00 : f32
    %94 = vector.broadcast %cst_26 : f32 to vector<16x64xf32>
    %95 = arith.cmpf ogt, %93, %94 : vector<16x64xf32>
    %cst_27 = arith.constant 2.000000e-01 : f32
    %96 = vector.broadcast %cst_27 : f32 to vector<16x64xf32>
    %97 = arith.mulf %96, %93 : vector<16x64xf32>
    %98 = arith.select %95, %93, %97 : vector<16x64xi1>, vector<16x64xf32>
    %99 = arith.addf %98, %1 : vector<16x64xf32>
    %cst_28 = arith.constant dense<0xFF800000> : vector<16xf32>
    %100 = vector.multi_reduction <maximumf>, %99, %cst_28 [1] : vector<16x64xf32> to vector<16xf32>
    %101 = vector.shape_cast %100 : vector<16xf32> to vector<16x1xf32>
    %102 = vector.broadcast %101 : vector<16x1xf32> to vector<16x64xf32>
    %103 = arith.subf %99, %102 : vector<16x64xf32>
    %104 = math.exp %103 : vector<16x64xf32>
    %105 = vector.extract_strided_slice %27 {offsets = [16, 0], sizes = [16, 16], strides = [1, 1]} : vector<32x16xf32> to vector<16x16xf32>
    %106 = tpu.concatenate %105, %105, %105, %105 in 0 : vector<16x16xf32>, vector<16x16xf32>, vector<16x16xf32>, vector<16x16xf32> -> vector<64x16xf32>
    %107 = arith.mulf %106, %5 : vector<64x16xf32>
    %108 = tpu.concatenate %107, %5 in 1 : vector<64x16xf32>, vector<64x16xf32> -> vector<64x32xf32>
    %cst_29 = arith.constant dense<0.000000e+00> : vector<16x32xf32>
    %109 = tpu.matmul %104, %108, %cst_29 {dimension_numbers = #tpu.dot_dimension_numbers<[1], [0], [0], [1], [0, 0, 1, 1], [], []>} : vector<16x64xf32>, vector<64x32xf32>, vector<16x32xf32> -> vector<16x32xf32>
    %110 = vector.extract_strided_slice %109 {offsets = [0, 16], sizes = [16, 16], strides = [1, 1]} : vector<16x32xf32> to vector<16x16xf32>
    %111 = tpu.reciprocal %110 {approx = true} : vector<16x16xf32> -> vector<16x16xf32>
    %112 = arith.mulf %110, %111 : vector<16x16xf32>
    %cst_30 = arith.constant 2.000000e+00 : f32
    %113 = vector.broadcast %cst_30 : f32 to vector<16x16xf32>
    %114 = arith.subf %113, %112 : vector<16x16xf32>
    %115 = arith.mulf %111, %114 : vector<16x16xf32>
    %116 = vector.extract_strided_slice %109 {offsets = [0, 0], sizes = [16, 16], strides = [1, 1]} : vector<16x32xf32> to vector<16x16xf32>
    %117 = arith.mulf %116, %115 : vector<16x16xf32>
    %118 = vector.extract_strided_slice %28 {offsets = [16, 0], sizes = [16, 16], strides = [1, 1]} : vector<32x16xf32> to vector<16x16xf32>
    %119 = arith.addf %117, %118 : vector<16x16xf32>
    %cst_31 = arith.constant 0.000000e+00 : f32
    %120 = vector.broadcast %cst_31 : f32 to vector<16x16xf32>
    %121 = arith.cmpf ogt, %119, %120 : vector<16x16xf32>
    %cst_32 = arith.constant 0.000000e+00 : f32
    %122 = vector.broadcast %cst_32 : f32 to vector<16x16xf32>
    %123 = arith.minimumf %119, %122 : vector<16x16xf32>
    %124 = math.exp %123 : vector<16x16xf32>
    %cst_33 = arith.constant 1.000000e+00 : f32
    %125 = vector.broadcast %cst_33 : f32 to vector<16x16xf32>
    %126 = arith.subf %124, %125 : vector<16x16xf32>
    %127 = arith.select %121, %119, %126 : vector<16x16xi1>, vector<16x16xf32>
    %128 = vector.extract_strided_slice %0 {offsets = [16, 16], sizes = [16, 16], strides = [1, 1]} : vector<32x32xf32> to vector<16x16xf32>
    %129 = arith.addf %127, %128 : vector<16x16xf32>
    %cst_34 = arith.constant 0.000000e+00 : f32
    %130 = vector.broadcast %cst_34 : f32 to vector<16x16xf32>
    %131 = arith.maximumf %129, %130 : vector<16x16xf32>
    %132 = vector.extract_strided_slice %6 {offsets = [16, 0], sizes = [16, 32], strides = [1, 1]} : vector<32x32xf32> to vector<16x32xf32>
    %133 = vector.extract_strided_slice %132 {offsets = [0, 0], sizes = [16, 16], strides = [1, 1]} : vector<16x32xf32> to vector<16x16xf32>
    %134 = arith.mulf %131, %133 : vector<16x16xf32>
    %135 = vector.extract_strided_slice %132 {offsets = [0, 16], sizes = [16, 16], strides = [1, 1]} : vector<16x32xf32> to vector<16x16xf32>
    %136 = arith.addf %134, %135 : vector<16x16xf32>
    %137 = tpu.concatenate %85, %136 in 0 : vector<16x16xf32>, vector<16x16xf32> -> vector<32x16xf32>
    %c0_35 = arith.constant 0 : index
    %c0_36 = arith.constant 0 : index
    %138 = vector.load %arg8[%c0_35, %c0_36] : memref<32x16xf32, #tpu.memory_space<vmem>>, vector<32x16xf32>
    tpu.vector_store %arg8[%c0_35, %c0_36], %137 {strides = array<i32>} : memref<32x16xf32, #tpu.memory_space<vmem>>, vector<32x16xf32>,
    return
  }
  func.func @transform_0(%arg0: i32) -> (i32, i32) {
    %c0_i32 = arith.constant 0 : i32
    %c0_i32_0 = arith.constant 0 : i32
    return %arg0, %c0_i32 : i32, i32
  }
  func.func @transform_1(%arg0: i32) -> (i32, i32) {
    %c0_i32 = arith.constant 0 : i32
    %c0_i32_0 = arith.constant 0 : i32
    %c0_i32_1 = arith.constant 0 : i32
    return %c0_i32, %c0_i32_0 : i32, i32
  }
  func.func @transform_2(%arg0: i32) -> (i32, i32) {
    %c0_i32 = arith.constant 0 : i32
    %c0_i32_0 = arith.constant 0 : i32
    %c0_i32_1 = arith.constant 0 : i32
    return %c0_i32, %c0_i32_0 : i32, i32
  }
  func.func @transform_3(%arg0: i32) -> (i32, i32) {
    %c0_i32 = arith.constant 0 : i32
    %c0_i32_0 = arith.constant 0 : i32
    %c0_i32_1 = arith.constant 0 : i32
    return %c0_i32, %c0_i32_0 : i32, i32
  }
  func.func @transform_4(%arg0: i32) -> (i32, i32) {
    %c0_i32 = arith.constant 0 : i32
    %c0_i32_0 = arith.constant 0 : i32
    %c0_i32_1 = arith.constant 0 : i32
    return %c0_i32, %c0_i32_0 : i32, i32
  }
  func.func @transform_5(%arg0: i32) -> (i32, i32) {
    %c0_i32 = arith.constant 0 : i32
    %c0_i32_0 = arith.constant 0 : i32
    %c0_i32_1 = arith.constant 0 : i32
    return %c0_i32, %c0_i32_0 : i32, i32
  }
  func.func @transform_6(%arg0: i32) -> (i32, i32) {
    %c0_i32 = arith.constant 0 : i32
    %c0_i32_0 = arith.constant 0 : i32
    return %arg0, %c0_i32 : i32, i32
  }
  func.func @transform_7(%arg0: i32) -> (i32, i32) {
    %c0_i32 = arith.constant 0 : i32
    %c0_i32_0 = arith.constant 0 : i32
    return %arg0, %c0_i32 : i32, i32
  }
}

</mosaic_0001>

<bundles_post_ra>
// kernel: tile.9
= control target key start
LH: loop header
LB: loop body
LE: loop exit
PB: predicated region body
PF: predicated region fallthrough
CT: control target
= control target key end

     0   :  { %vm82_vm0 = vcmask 1047556   ;;  %vm84_vm1 = vcmask 130048   ;;  %s195_s9 = smov 48   ;;  %s196_s14 = smov 16   ;;  %vm103_vm2 = vcmask 523648   ;;  %vm124_vm3 = vcmask 392448   ;;  %s289_s0 = inlined_call_operand.vmem [shape: f32[16,4,16], index: 0, kind: input, shape index: {}]   ;;  %s290_s1 = inlined_call_operand.vmem [shape: f32[16,64], index: 1, kind: output, shape index: {}]  }
   0x1   :  { %v180_v0 = vld [vmem:[%s289_s0 + $0x1c] sm:$0xf]  ;;  %v181_v1 = vld [vmem:[%s289_s0 + $0x18] sm:$0xf]  ;;  %v182_v2 = vld [vmem:[%s289_s0 + $0x14] sm:$0xf] }
   0x2   :  { %48 = vst [vmem:[#allocation0 + $0x38] sm:$0xf] %v180_v0  ;;  %53 = vst [vmem:[#allocation0 + $0x30] sm:$0xf] %v181_v1  ;;  %v183_v3 = vld [vmem:[%s289_s0 + $0x10] sm:$0xf] }
   0x3   :  { %58 = vst [vmem:[#allocation0 + $0x28] sm:$0xf] %v182_v2  ;;  %v184_v4 = vld [vmem:[%s289_s0 + $0xc] sm:$0xf]  ;;  %v185_v5 = vld [vmem:[%s289_s0 + $0x8] sm:$0xf] }
   0x4   :  { %63 = vst [vmem:[#allocation0 + $0x20] sm:$0xf] %v183_v3  ;;  %68 = vst [vmem:[#allocation0 + $0x18] sm:$0xf] %v184_v4  ;;  %v186_v6 = vld [vmem:[%s289_s0 + $0x4] sm:$0xf] }
   0x5   :  { %73 = vst [vmem:[#allocation0 + $0x10] sm:$0xf] %v185_v5  ;;  %v78_v7 = vld [vmem:[%s289_s0] sm:$0xf]  ;;  %77 = vst [vmem:[#allocation0 + $0x8] sm:$0xf] %v186_v6 }
   0x6   :  { %79 = vst [vmem:[#allocation0] sm:$0xf] %v78_v7  ;;  %v172_v8 = vld [vmem:[%s289_s0 + $0x3c] sm:$0xf]  ;;  %v173_v9 = vld [vmem:[%s289_s0 + $0x38] sm:$0xf] }
   0x7   :  { %8 = vst [vmem:[#allocation0 + $0x78] sm:$0xf] %v172_v8  ;;  %13 = vst [vmem:[#allocation0 + $0x70] sm:$0xf] %v173_v9  ;;  %v174_v10 = vld [vmem:[%s289_s0 + $0x34] sm:$0xf] }
   0x8   :  { %v175_v11 = vld [vmem:[%s289_s0 + $0x30] sm:$0xf]  ;;  %v176_v12 = vld [vmem:[%s289_s0 + $0x2c] sm:$0xf]  ;;  %18 = vst [vmem:[#allocation0 + $0x68] sm:$0xf] %v174_v10 }
   0x9   :  { %23 = vst [vmem:[#allocation0 + $0x60] sm:$0xf] %v175_v11  ;;  %28 = vst [vmem:[#allocation0 + $0x58] sm:$0xf] %v176_v12  ;;  %v177_v13 = vld [vmem:[%s289_s0 + $0x28] sm:$0xf] }
   0xa   :  { %v178_v14 = vld [vmem:[%s289_s0 + $0x24] sm:$0xf]  ;;  %v179_v15 = vld [vmem:[%s289_s0 + $0x20] sm:$0xf]  ;;  %33 = vst [vmem:[#allocation0 + $0x50] sm:$0xf] %v177_v13 }
   0xb   :  { %38 = vst [vmem:[#allocation0 + $0x48] sm:$0xf] %v178_v14  ;;  %43 = vst [vmem:[#allocation0 + $0x40] sm:$0xf] %v179_v15  ;;  %s194_s0 = smov 32   ;;  %vm145_vm4 = vcmask 261248  }
   0xc   :  { %v119_v16 = vld [vmem:[#allocation0 + $0x2] ss:$8 sm:$0xf0]   ;;  %v98_v17 = vld [vmem:[#allocation0 + $0x3] ss:$8 sm:$0xf0]  }
   0xd   :  { %v117_v18 = vld [vmem:[#allocation0 + $0x2] ss:$8 sm:$0xf]   ;;  %v96_v19 = vld [vmem:[#allocation0 + $0x3] ss:$8 sm:$0xf]  }
   0xe   :  { %v121_v20 = vsel %vm82_vm0, %v119_v16, %v117_v18  ;;  %v100_v21 = vsel %vm82_vm0, %v98_v17, %v96_v19  ;;  %v138_v24 = vld [vmem:[#allocation0 + $0x1] ss:$8 sm:$0xf]   ;;  %v80_v32 = vld [vmem:[#allocation0] ss:$8 sm:$0xf]  }
   0xf   :  { %122 = vrot.lane.b32.xlu1 %v121_v20, %s194_s0  ;;  %101 = vrot.lane.b32.xlu0 %v100_v21, %s195_s9  ;;  %v140_v25 = vld [vmem:[#allocation0 + $0x1] ss:$8 sm:$0xf0]   ;;  %v81_v33 = vld [vmem:[#allocation0] ss:$8 sm:$0xf0]  }
  0x10   :  { %v129_v22 = vld [vmem:[#allocation0 + $0x42] ss:$8 sm:$0xf0]   ;;  %v108_v23 = vld [vmem:[#allocation0 + $0x43] ss:$8 sm:$0xf0]   ;;  %v83_v34 = vsel %vm82_vm0, %v81_v33, %v80_v32  ;;  %v142_v38 = vsel %vm82_vm0, %v140_v25, %v138_v24 }
  0x11   :  { %v150_v31 = vld [vmem:[#allocation0 + $0x41] ss:$8 sm:$0xf0]   ;;  %v89_v36 = vld [vmem:[#allocation0 + $0x40] ss:$8 sm:$0xf0]  }
  0x12   :  { %v127_v26 = vld [vmem:[#allocation0 + $0x42] ss:$8 sm:$0xf]   ;;  %v106_v27 = vld [vmem:[#allocation0 + $0x43] ss:$8 sm:$0xf]  }
  0x13   :  { %v131_v28 = vsel %vm82_vm0, %v129_v22, %v127_v26  ;;  %v110_v29 = vsel %vm82_vm0, %v108_v23, %v106_v27  ;;  %v148_v30 = vld [vmem:[#allocation0 + $0x41] ss:$8 sm:$0xf]   ;;  %v87_v35 = vld [vmem:[#allocation0 + $0x40] ss:$8 sm:$0xf]  }
  0x14   :  { %132 = vrot.lane.b32.xlu1 %v131_v28, %s194_s0  ;;  %111 = vrot.lane.b32.xlu0 %v110_v29, %s195_s9  ;;  %v152_v37 = vsel %vm82_vm0, %v150_v31, %v148_v30  ;;  %85 = vst.msk [vmem:[%s290_s1] sm:$0xff] %vm84_vm1, %v83_v34   ;;  %v91_v39 = vsel %vm82_vm0, %v89_v36, %v87_v35 }
  0x15   :  { %187 = vst.msk [vmem:[%s290_s1 + $0x8] sm:$0xff] %vm84_vm1, %v91_v39  }
  0x18   :  { %153 = vrot.lane.b32.xlu1 %v152_v37, %s196_s14  ;;  %143 = vrot.lane.b32.xlu0 %v142_v38, %s196_s14 }
  0x81   :  { %v123_v40 = vpop.permute.xlu1 %122   ;;  %v102_v41 = vpop.permute.xlu0 %101  }
  0x82   :  { %104 = vst.msk [vmem:[%s290_s1] sm:$0xff] %vm103_vm2, %v102_v41  }
  0x83   :  { %125 = vst.msk [vmem:[%s290_s1] sm:$0xff] %vm124_vm3, %v123_v40  }
  0x86   :  { %v133_v42 = vpop.permute.xlu1 %132   ;;  %v112_v43 = vpop.permute.xlu0 %111  }
  0x87   :  { %188 = vst.msk [vmem:[%s290_s1 + $0x8] sm:$0xff] %vm103_vm2, %v112_v43  }
  0x88   :  { %189 = vst.msk [vmem:[%s290_s1 + $0x8] sm:$0xff] %vm124_vm3, %v133_v42  }
  0x8a   :  { %v154_v44 = vpop.permute.xlu1 %153   ;;  %v144_v45 = vpop.permute.xlu0 %143  }
  0x8b   :  { %190 = vst.msk [vmem:[%s290_s1 + $0x8] sm:$0xff] %vm145_vm4, %v154_v44   ;;  %146 = vst.msk [vmem:[%s290_s1] sm:$0xff] %vm145_vm4, %v144_v45  }

// kernel: stgat_block_forward.1
= control target key start
LH: loop header
LB: loop body
LE: loop exit
PB: predicated region body
PF: predicated region fallthrough
CT: control target
= control target key end

     0   :  { %vm63_vm0 = vcmask 261120   ;;  %v1146_v43 = vmov 0.0|0.0   ;;  %s1147_s10 = smov 64   ;;  %vm1148_vm1 = vmmov 0   ;;  %v1149_v48 = vmov 0.0   ;;  %s1152_s13 = smov 32   ;;  %s1465_s2 = inlined_call_operand.vmem [shape: f32[33,128], index: 2, kind: input, shape index: {}]   ;;  %s1466_s0 = inlined_call_operand.vmem [shape: f32[32,32], index: 0, kind: input, shape index: {}]   ;;  %s1467_s3 = inlined_call_operand.vmem [shape: f32[65,96], index: 3, kind: input, shape index: {}]   ;;  %s1468_s4 = inlined_call_operand.vmem [shape: f32[4,65], index: 4, kind: input, shape index: {}]   ;;  %s1469_s1 = inlined_call_operand.vmem [shape: f32[16,64], index: 1, kind: input, shape index: {}]   ;;  %s1470_s5 = inlined_call_operand.vmem [shape: f32[64,16], index: 5, kind: input, shape index: {}]   ;;  %s1471_s6 = inlined_call_operand.vmem [shape: f32[32,32], index: 6, kind: input, shape index: {}]   ;;  %s1472_s7 = inlined_call_operand.vmem [shape: f32[32,16], index: 7, kind: output, shape index: {}]  }
   0x1   :  { %v32_v0 = vld [vmem:[%s1465_s2] sm:$0xff]  ;;  %v33_v1 = vld [vmem:[%s1465_s2 + $0x8] sm:$0xff]  ;;  %v34_v2 = vld [vmem:[%s1465_s2 + $0x10] sm:$0xff]  ;;  %v1150_v50 = vmov 64   ;;  %vm213_vm2 = vcmask 523264   ;;  %s1153_s14 = smov 16  }
   0x2   :  { %v1011_v3 = vpack.c.bf16 %v33_v1, %v32_v0  ;;  %v35_v4 = vld [vmem:[%s1465_s2 + $0x18] sm:$0xff]  ;;  %v1211_v5 = vld [vmem:[%s1466_s0] sm:$0xff]  ;;  %v1218_v7 = vld [vmem:[%s1466_s0 + $0x8] sm:$0xff]  ;;  %1085 = vset.pattern.permute.xlu0 %v1150_v50  ;;  %s1154_s15 = smov 48   ;;  %vm401_vm4 = vcmask 130048   ;;  %vm404_vm5 = vcmask 392192  }
   0x3   :  { %v1015_v6 = vpack.c.bf16 %v35_v4, %v34_v2  ;;  %934 = vmatprep.mubr.msk.f32.mxu0 %vm63_vm0, %v1211_v5  ;;  %v1223_v8 = vld [vmem:[%s1466_s0 + $0x10] sm:$0xff]  ;;  %v1232_v9 = vld [vmem:[%s1466_s0 + $0x18] sm:$0xff]  ;;  %v37_v10 = vld [vmem:[%s1467_s3] sm:$0xff]  ;;  %vm432_vm7 = vcmask 785664  }
   0x4   :  { %1012 = vmatprep.subr.bf16.mxu0 %v1011_v3  ;;  %v38_v11 = vld [vmem:[%s1467_s3 + $0x8] sm:$0xff]  ;;  %v39_v12 = vld [vmem:[%s1467_s3 + $0x10] sm:$0xff]  ;;  %v40_v14 = vld [vmem:[%s1467_s3 + $0x18] sm:$0xff] }
   0x5   :  { %1014 = vmatpush3.bf16.msra.mxu0 %v1011_v3  ;;  %v1019_v13 = vpack.c.bf16 %v38_v11, %v37_v10  ;;  %v1023_v15 = vpack.c.bf16 %v40_v14, %v39_v12  ;;  %v854_v16 = vld [vmem:[%s1465_s2 + $0x20] ss:$0 sm:$0xff]  ;;  %v42_v30 = vld [vmem:[%s1467_s3 + $0x28] sm:$0xff]  ;;  %v43_v36 = vld [vmem:[%s1467_s3 + $0x30] sm:$0xff] }
   0x6   :  { %1016 = vmatprep.subr.bf16.mxu0 %v1015_v6  ;;  %v41_v29 = vld [vmem:[%s1467_s3 + $0x20] sm:$0xff]  ;;  %v44_v37 = vld [vmem:[%s1467_s3 + $0x38] sm:$0xff]  ;;  %vm1037_vm3 = vmpackc.low %vm213_vm2, %vm213_vm2 }
   0x7   :  { %1020 = vmatprep.subr.bf16.mxu1 %v1019_v13  ;;  %v1027_v32 = vpack.c.bf16 %v42_v30, %v41_v29  ;;  %v1031_v39 = vpack.c.bf16 %v44_v37, %v43_v36  ;;  %v46_v49 = vld [vmem:[%s1468_s4] sm:$0xf]  ;;  %s1151_s4 = smov 112  }
   0x8   :  { %1022 = vmatpush3.bf16.msra.mxu1 %v1019_v13  ;;  %v30_v29 = vld [vmem:[%s1469_s1] sm:$0xff] }
   0x9   :  { %1018 = vmatpush3.bf16.msra.mxu0 %v1015_v6  ;;  %1024 = vmatprep.subr.bf16.mxu1 %v1023_v15 }
   0xa   :  { %1035 = vmatprep.subr.bf16.mxu0 %v1146_v43 }
   0xc   :  { %935 = vmatmul.mubr.msk.f32.vlgmr.msra.gmra.mrb[0].mxu0 %vm63_vm0, %v1218_v7  ;;  %1026 = vmatpush3.bf16.msra.mxu1 %v1023_v15 }
   0xd   :  { %937 = vmatprep.mubr.msk.f32.mxu0 %vm63_vm0, %v1223_v8  ;;  %1028 = vmatprep.subr.bf16.mxu1 %v1027_v32 }
  0x10   :  { %938 = vmatmul.mubr.msk.f32.gmra.mrb[2].mxu0 %vm63_vm0, %v1232_v9  ;;  %1030 = vmatpush3.bf16.msra.mxu1 %v1027_v32 }
  0x11   :  { %1032 = vmatprep.subr.bf16.mxu1 %v1031_v39  ;;  %970 = vmatprep.mubr.msk.f32.mxu0 %vm1148_vm1, %v1149_v48 }
  0x14   :  { %1034 = vmatpush3.bf16.msra.mxu1 %v1031_v39 }
  0xdf   :  { %v936_v17 = vpop.f32.mrb[0].mxu0 }
  0xe0   :  { %v1251_v18 = vadd.f32 %v936_v17, %v854_v16  ;;  %v142_v19 = vpop.f32.mrb[1].mxu0 }
  0xe1   :  { %v143_v20 = vadd.f32 %v854_v16, %v142_v19 }
  0xe2   :  { %v860_v21 = vmul.f32 -1.442695, %v1251_v18 }
  0xe3   :  { %v859_v22 = vmul.f32 -1.442695, %v143_v20  ;;  %v939_v23 = vpop.f32.mrb[2].mxu0 }
  0xe4   :  { %1106 = vpow2.f32 %v860_v21  ;;  %v1254_v24 = vadd.f32 %v939_v23, %v854_v16  ;;  %v152_v25 = vpop.f32.mrb[3].mxu0 }
  0xe5   :  { %1108 = vpow2.f32 %v859_v22  ;;  %v153_v26 = vadd.f32 %v854_v16, %v152_v25  ;;  %v406_v16 = vlaneseq }
  0xe6   :  { %v862_v27 = vmul.f32 -1.442695, %v1254_v24 }
  0xe7   :  { %v861_v28 = vmul.f32 -1.442695, %v153_v26 }
  0xe8   :  { %1110 = vpow2.f32 %v862_v27 }
  0xe9   :  { %1112 = vpow2.f32 %v861_v28 }
  0xee   :  { %v1107_v31 = vpop.eup %1106 }
  0xef   :  { %v1109_v33 = vpop.eup %1108  ;;  %v174_v35 = vadd.f32 1.0, %v1107_v31 }
  0xf0   :  { %v173_v34 = vadd.f32 1.0, %v1109_v33 }
  0xf2   :  { %v1111_v38 = vpop.eup %1110  ;;  %1114 = vrcp.f32 %v173_v34  ;;  %v31_v34 = vld [vmem:[%s1469_s1 + $0x8] sm:$0xff] }
  0xf3   :  { %v1113_v40 = vpop.eup %1112  ;;  %v176_v41 = vadd.f32 1.0, %v1111_v38  ;;  %1116 = vrcp.f32 %v174_v35  ;;  %v863_v35 = vld [vmem:[%s1467_s3 + $0x40] ss:$0 sm:$0xff] }
  0xf4   :  { %v175_v42 = vadd.f32 1.0, %v1113_v40 }
  0xf6   :  { %1118 = vrcp.f32 %v175_v42 }
  0xf7   :  { %1120 = vrcp.f32 %v176_v41 }
  0xfc   :  { %v1115_v44 = vpop.eup %1114 }
  0xfd   :  { %189 = vrot.lane.b32.xlu0 %v1115_v44, %s1147_s10  ;;  %v1117_v45 = vpop.eup %1116 }
 0x100   :  { %v1119_v46 = vpop.eup %1118 }
 0x101   :  { %193 = vrot.lane.b32.xlu1 %v1119_v46, %s1147_s10  ;;  %191 = vrot.lane.b32.xlu0 %v1117_v45, %s1147_s10  ;;  %v1121_v47 = vpop.eup %1120 }
 0x105   :  { %195 = vrot.lane.b32.xlu1 %v1121_v47, %s1147_s10  ;;  %313 = vperm.xlu0 %1085, %v46_v49  }
 0x16f   :  { %v190_v51 = vpop.permute.xlu0 %189 }
 0x170   :  { %v201_v52 = vadd.f32 %v190_v51, %v143_v20 }
 0x172   :  { %v205_v53 = vmax.f32 %v201_v52, 0.0 }
 0x173   :  { %v194_v54 = vpop.permute.xlu1 %193  ;;  %v192_v55 = vpop.permute.xlu0 %191 }
 0x174   :  { %v203_v56 = vadd.f32 %v194_v54, %v153_v26  ;;  %v202_v57 = vadd.f32 %v192_v55, %v1251_v18  ;;  %956 = vmatprep.mubr.msk.f32.mxu1 %vm213_vm2, %v205_v53  ;;  %v407_v18 = vshrl.u32 %v406_v16, 7 }
 0x176   :  { %v207_v58 = vmax.f32 %v203_v56, 0.0  ;;  %v206_v59 = vmax.f32 %v202_v57, 0.0  ;;  %v408_v21 = vsub.s32 0, %v407_v18 }
 0x177   :  { %v196_v60 = vpop.permute.xlu1 %195 }
 0x178   :  { %v1036_v61 = vpack.c.bf16 %v206_v59, %v205_v53  ;;  %v204_v62 = vadd.f32 %v196_v60, %v1254_v24  ;;  %957 = vmatmul.mubr.msk.f32.vlgmr.msra.gmra.mrb[0].mxu1 %vm213_vm2, %v206_v59 }
 0x179   :  { %959 = vmatprep.mubr.msk.f32.mxu1 %vm213_vm2, %v207_v58 }
 0x17a   :  { %v208_v63 = vmax.f32 %v204_v62, 0.0  ;;  %1038 = vmatpush3.bf16.xpose.msk.msra.mxu0 %vm1037_vm3, %v1036_v61 }
 0x17b   :  { %1039 = vmatprep.subr.bf16.mxu0 %v1146_v43 }
 0x17c   :  { %960 = vmatmul.mubr.msk.f32.gmra.mrb[2].mxu1 %vm213_vm2, %v208_v63  ;;  %v1040_v0 = vpack.c.bf16 %v208_v63, %v207_v58 }
 0x182   :  { %1042 = vmatpush3.bf16.xpose.msk.msra.mxu0 %vm1037_vm3, %v1040_v0  ;;  %v47_v0 = vld [vmem:[%s1470_s5] sm:$0xff] }
 0x184   :  { %v314_v6 = vpop.permute.xlu0 %313 }
 0x189   :  { %971 = vmatmul.mubr.msk.f32.vlgmr.msra.gmra.mrb[4].mxu0 %vm213_vm2, %v46_v49 }
 0x24b   :  { %v958_v1 = vpop.f32.mrb[0].mxu1 }
 0x24c   :  { %v292_v2 = vpop.f32.mrb[1].mxu1  ;;  %v1305_v37 = vadd.f32 %v958_v1, %v863_v35  ;;  %v48_v1 = vld [vmem:[%s1470_s5 + $0x8] sm:$0xff] }
 0x24d   :  { %v1303_v36 = vadd.f32 %v863_v35, %v292_v2  ;;  %v1086_v2 = vpack.i.bf16 %v48_v1, %v47_v0 }
 0x24f   :  { %v961_v3 = vpop.f32.mrb[2].mxu1 }
 0x250   :  { %v302_v4 = vpop.f32.mrb[3].mxu1  ;;  %v1309_v43 = vadd.f32 %v961_v3, %v863_v35  ;;  %v51_v3 = vld [vmem:[%s1470_s5 + $0x20] sm:$0xff] }
 0x251   :  { %v1311_v44 = vadd.f32 %v863_v35, %v302_v4  ;;  %v52_v4 = vld [vmem:[%s1470_s5 + $0x28] sm:$0xff] }
 0x253   :  { %v683_v35 = vmul.f32 %v1311_v44, %v47_v0 }
 0x25c   :  { %v384_v10 = vpop.f32.mrb[4].mxu0 }
 0x25d   :  { %v385_v11 = vadd.f32 %v384_v10, %v314_v6  ;;  %v972_v12 = vpop.f32.mrb[5].mxu0  ;;  %v1096_v6 = vpack.i.bf16 %v52_v4, %v51_v3  ;;  %v50_v10 = vld [vmem:[%s1470_s5 + $0x18] sm:$0xff] }
 0x25e   :  { %v1341_v12 = vld [vmem:[%s1470_s5 + $0x30] sm:$0xff] }
 0x25f   :  { %640 = vrot.lane.b32.xlu1 %v385_v11, %s1151_s4  ;;  %v393_v13 = vrot.slane %v385_v11, 2  ;;  %v389_v14 = vrot.slane %v385_v11, 1  ;;  %v397_v15 = vrot.slane %v385_v11, 3 }
 0x261   :  { %394 = vrot.lane.b32.xlu0 %v393_v13, %s1152_s13 }
 0x263   :  { %390 = vrot.lane.b32.xlu1 %v389_v14, %s1153_s14 }
 0x265   :  { %398 = vrot.lane.b32.xlu0 %v397_v15, %s1154_s15 }
 0x267   :  { %644 = vrot.lane.b32.xlu1 %v393_v13, %s1153_s14  ;;  %v1346_v13 = vld [vmem:[%s1470_s5 + $0x38] sm:$0xff] }
 0x26b   :  { %647 = vrot.lane.b32.xlu1 %v397_v15, %s1152_s13  ;;  %v1101_v15 = vpack.i.bf16 %v1346_v13, %v1341_v12 }
 0x2d1   :  { %v641_v17 = vpop.permute.xlu1 %640 }
 0x2d2   :  { %v650_v28 = vsel %vm401_vm4, %v641_v17, %v389_v14 }
 0x2d3   :  { %v395_v19 = vpop.permute.xlu0 %394 }
 0x2d5   :  { %v391_v20 = vpop.permute.xlu1 %390 }
 0x2d6   :  { %v402_v22 = vsel %vm401_vm4, %v385_v11, %v391_v20  ;;  %v49_v11 = vld [vmem:[%s1470_s5 + $0x10] sm:$0xff]  ;;  %s1155_s5 = smov 96  }
 0x2d7   :  { %v399_v23 = vpop.permute.xlu0 %398  ;;  %v403_v24 = vsel %vm63_vm0, %v402_v22, %v395_v19  ;;  %v1091_v14 = vpack.i.bf16 %v50_v10, %v49_v11 }
 0x2d8   :  { %v405_v25 = vsel %vm404_vm5, %v403_v24, %v399_v23  ;;  %v446_v23 = vmul.f32 %v1305_v37, %v48_v1  ;;  %v448_v24 = vmul.f32 %v1305_v37, %v50_v10 }
 0x2d9   :  { %v409_v26 = vrot.slane %v405_v25, %v408_v21  ;;  %v645_v27 = vpop.permute.xlu1 %644 }
 0x2da   :  { %v651_v30 = vsel %vm63_vm0, %v650_v28, %v645_v27  ;;  %v447_v27 = vmul.f32 %v1303_v36, %v49_v11  ;;  %v450_v28 = vmul.f32 %v1305_v37, %v52_v4 }
 0x2db   :  { %411 = vrot.lane.b32.xlu0 %v409_v26, %s1152_s13  ;;  %v445_v26 = vmul.f32 %v1303_v36, %v47_v0 }
 0x2dd   :  { %v648_v31 = vpop.permute.xlu1 %647 }
 0x2de   :  { %v652_v32 = vsel %vm404_vm5, %v651_v30, %v648_v31  ;;  %v684_v31 = vmul.f32 %v1309_v43, %v48_v1 }
 0x2df   :  { %v656_v33 = vrot.slane %v652_v32, %v408_v21  ;;  %424 = vrot.lane.b32.xlu0 %v30_v29, %s1152_s13  ;;  %v449_v32 = vmul.f32 %v1303_v36, %v51_v3 }
 0x2e1   :  { %658 = vrot.lane.b32.xlu1 %v656_v33, %s1152_s13 }
 0x2e5   :  { %426 = vrot.lane.b32.xlu1 %v31_v34, %s1152_s13 }
 0x34d   :  { %v412_v38 = vpop.permute.xlu0 %411 }
 0x34e   :  { %v414_v39 = vadd.f32 %v412_v38, %v1303_v36  ;;  %v415_v40 = vadd.f32 %v412_v38, %v1305_v37 }
 0x350   :  { %v418_v41 = vmul.f32 0.2, %v414_v39  ;;  %vm416_vm6 = vcmp.gt.f32.partialorder %v414_v39, 0.0  ;;  %v419_v46 = vmul.f32 0.2, %v415_v40  ;;  %vm417_vm8 = vcmp.gt.f32.partialorder %v415_v40, 0.0 }
 0x351   :  { %v425_v42 = vpop.permute.xlu0 %424 }
 0x352   :  { %v420_v45 = vsel %vm416_vm6, %v414_v39, %v418_v41  ;;  %v421_v54 = vsel %vm417_vm8, %v415_v40, %v419_v46  ;;  %v685_v40 = vmul.f32 %v1311_v44, %v49_v11  ;;  %v686_v41 = vmul.f32 %v1309_v43, %v50_v10 }
 0x353   :  { %v430_v47 = vadd.f32 %v425_v42, %v420_v45  ;;  %v659_v48 = vpop.permute.xlu1 %658  ;;  %v451_v11 = vmul.f32 %v1303_v36, %v1341_v12 }
 0x354   :  { %v661_v49 = vadd.f32 %v659_v48, %v1311_v44  ;;  %v662_v50 = vadd.f32 %v659_v48, %v1309_v43 }
 0x355   :  { %v433_v51 = vsel %vm432_vm7, %v430_v47, -inf }
 0x356   :  { %v665_v52 = vmul.f32 0.2, %v661_v49  ;;  %v666_v53 = vmul.f32 0.2, %v662_v50  ;;  %434 = vmax.xlane.f32.xlu0 %v433_v51  ;;  %vm664_vm9 = vcmp.gt.f32.partialorder %v662_v50, 0.0  ;;  %vm663_vm10 = vcmp.gt.f32.partialorder %v661_v49, 0.0 }
 0x357   :  { %v427_v55 = vpop.permute.xlu1 %426 }
 0x358   :  { %v668_v56 = vsel %vm664_vm9, %v662_v50, %v666_v53  ;;  %v431_v57 = vadd.f32 %v427_v55, %v421_v54  ;;  %v667_v58 = vsel %vm663_vm10, %v661_v49, %v665_v52 }
 0x359   :  { %v669_v59 = vadd.f32 %v667_v58, %v425_v42  ;;  %v670_v60 = vadd.f32 %v668_v56, %v427_v55  ;;  %v688_v42 = vmul.f32 %v1309_v43, %v52_v4  ;;  %v687_v56 = vmul.f32 %v1311_v44, %v51_v3 }
 0x35a   :  { %v436_v61 = vsel %vm432_vm7, %v431_v57, -inf }
 0x35b   :  { %437 = vmax.xlane.f32.xlu0 %v436_v61  ;;  %v671_v62 = vsel %vm432_vm7, %v669_v59, -inf  ;;  %v674_v63 = vsel %vm432_vm7, %v670_v60, -inf }
 0x35c   :  { %672 = vmax.xlane.f32.xlu1 %v671_v62 }
 0x35f   :  { %675 = vmax.xlane.f32.xlu0 %v674_v63 }
 0x36d   :  { %1087 = vrot.lane.b32.xlu1 %v1086_v2, %s1153_s14 }
 0x371   :  { %1097 = vrot.lane.b32.xlu1 %v1096_v6, %s1153_s14 }
 0x375   :  { %1092 = vrot.lane.b32.xlu0 %v1091_v14, %s1153_s14  ;;  %1102 = vrot.lane.b32.xlu1 %v1101_v15, %s1153_s14 }
 0x3e3   :  { %v435_v16 = vpop.xlane.xlu0 %434 }
 0x3e4   :  { %v439_v17 = vsub.f32 %v430_v47, %v435_v16 }
 0x3e6   :  { %v441_v18 = vmul.f32 1.442695, %v439_v17  ;;  %v452_v17 = vmul.f32 %v1305_v37, %v1346_v13 }
 0x3e8   :  { %1122 = vpow2.f32 %v441_v18  ;;  %v438_v19 = vpop.xlane.xlu0 %437  ;;  %v689_v18 = vmul.f32 %v1311_v44, %v1341_v12 }
 0x3e9   :  { %v440_v20 = vsub.f32 %v431_v57, %v438_v19  ;;  %v673_v21 = vpop.xlane.xlu1 %672  ;;  %v690_v19 = vmul.f32 %v1309_v43, %v1346_v13 }
 0x3ea   :  { %v677_v22 = vsub.f32 %v669_v59, %v673_v21 }
 0x3eb   :  { %v443_v25 = vmul.f32 1.442695, %v440_v20 }
 0x3ec   :  { %v679_v29 = vmul.f32 1.442695, %v677_v22  ;;  %v676_v30 = vpop.xlane.xlu0 %675 }
 0x3ed   :  { %1124 = vpow2.f32 %v443_v25  ;;  %v678_v33 = vsub.f32 %v670_v60, %v676_v30  ;;  %v1088_v34 = vpop.permute.xlu1 %1087 }
 0x3ee   :  { %1126 = vpow2.f32 %v679_v29  ;;  %v1090_v38 = vunpack.i.h.bf16 %v1088_v34  ;;  %v1089_v39 = vunpack.i.l.bf16 %v1088_v34 }
 0x3ef   :  { %v681_v45 = vmul.f32 1.442695, %v678_v33 }
 0x3f0   :  { %v1093_v46 = vpop.permute.xlu0 %1092  ;;  %v485_v47 = vsel %vm401_vm4, %v445_v26, %v1089_v39  ;;  %v486_v48 = vsel %vm401_vm4, %v446_v23, %v1090_v38  ;;  %v691_v49 = vsel %vm401_vm4, %v683_v35, %v1089_v39  ;;  %v692_v50 = vsel %vm401_vm4, %v684_v31, %v1090_v38 }
 0x3f1   :  { %1128 = vpow2.f32 %v681_v45  ;;  %v1095_v51 = vunpack.i.h.bf16 %v1093_v46  ;;  %v1094_v52 = vunpack.i.l.bf16 %v1093_v46  ;;  %v1098_v53 = vpop.permute.xlu1 %1097  ;;  %v1043_v54 = vpack.c.bf16 %v486_v48, %v485_v47 }
 0x3f2   :  { %v1123_v55 = vpop.eup %1122  ;;  %v1100_v57 = vunpack.i.h.bf16 %v1098_v53  ;;  %v1099_v58 = vunpack.i.l.bf16 %v1098_v53  ;;  %v1059_v59 = vpack.c.bf16 %v692_v50, %v691_v49 }
 0x3f3   :  { %495 = vrot.lane.b32.xlu0 %v1123_v55, %s1155_s5  ;;  %1044 = vmatprep.subr.bf16.mxu1 %v1043_v54  ;;  %v487_v60 = vsel %vm401_vm4, %v447_v27, %v1094_v52  ;;  %v488_v61 = vsel %vm401_vm4, %v448_v24, %v1095_v51  ;;  %v693_v62 = vsel %vm401_vm4, %v685_v40, %v1094_v52 }
 0x3f4   :  { %1060 = vmatprep.subr.bf16.mxu0 %v1059_v59  ;;  %1046 = vmatpush3.bf16.msra.mxu1 %v1043_v54  ;;  %v1047_v63 = vpack.c.bf16 %v488_v61, %v487_v60  ;;  %v694_v0 = vsel %vm401_vm4, %v686_v41, %v1095_v51  ;;  %v489_v1 = vsel %vm401_vm4, %v449_v32, %v1099_v58  ;;  %v1420_v54 = vld [vmem:[%s1471_s6 + $0x8] sm:$0xff] }
 0x3f5   :  { %1062 = vmatpush3.bf16.msra.mxu0 %v1059_v59  ;;  %v1103_v2 = vpop.permute.xlu1 %1102  ;;  %v1063_v3 = vpack.c.bf16 %v694_v0, %v693_v62  ;;  %v490_v4 = vsel %vm401_vm4, %v450_v28, %v1100_v57  ;;  %v695_v6 = vsel %vm401_vm4, %v687_v56, %v1099_v58  ;;  %v696_v10 = vsel %vm401_vm4, %v688_v42, %v1100_v57 }
 0x3f6   :  { %v1105_v14 = vunpack.i.h.bf16 %v1103_v2  ;;  %v1104_v15 = vunpack.i.l.bf16 %v1103_v2  ;;  %1048 = vmatprep.subr.bf16.mxu1 %v1047_v63  ;;  %v1051_v21 = vpack.c.bf16 %v490_v4, %v489_v1  ;;  %v1067_v22 = vpack.c.bf16 %v696_v10, %v695_v6 }
 0x3f7   :  { %v1125_v16 = vpop.eup %1124  ;;  %1064 = vmatprep.subr.bf16.mxu0 %v1063_v3 }
 0x3f8   :  { %v1127_v20 = vpop.eup %1126  ;;  %497 = vrot.lane.b32.xlu0 %v1125_v16, %s1155_s5  ;;  %1050 = vmatpush3.bf16.msra.mxu1 %v1047_v63  ;;  %v491_v23 = vsel %vm401_vm4, %v451_v11, %v1104_v15  ;;  %v492_v24 = vsel %vm401_vm4, %v452_v17, %v1105_v14  ;;  %v697_v25 = vsel %vm401_vm4, %v689_v18, %v1104_v15 }
 0x3f9   :  { %1066 = vmatpush3.bf16.msra.mxu0 %v1063_v3  ;;  %701 = vrot.lane.b32.xlu1 %v1127_v20, %s1155_s5  ;;  %v698_v12 = vsel %vm401_vm4, %v690_v19, %v1105_v14  ;;  %v1055_v26 = vpack.c.bf16 %v492_v24, %v491_v23 }
 0x3fa   :  { %1052 = vmatprep.subr.bf16.mxu1 %v1051_v21  ;;  %1068 = vmatprep.subr.bf16.mxu0 %v1067_v22  ;;  %v1071_v27 = vpack.c.bf16 %v698_v12, %v697_v25 }
 0x3fb   :  { %v1129_v13 = vpop.eup %1128 }
 0x3fc   :  { %598 = vrot.lane.b32.xlu0 %v1303_v36, %s1151_s4  ;;  %1054 = vmatpush3.bf16.msra.mxu1 %v1051_v21 }
 0x3fd   :  { %1070 = vmatpush3.bf16.msra.mxu0 %v1067_v22  ;;  %703 = vrot.lane.b32.xlu1 %v1129_v13, %s1155_s5 }
 0x3fe   :  { %1056 = vmatprep.subr.bf16.mxu1 %v1055_v26  ;;  %1072 = vmatprep.subr.bf16.mxu0 %v1071_v27 }
 0x400   :  { %1058 = vmatpush3.bf16.msra.mxu1 %v1055_v26 }
 0x401   :  { %1074 = vmatpush3.bf16.msra.mxu0 %v1071_v27  ;;  %600 = vrot.lane.b32.xlu1 %v1305_v37, %s1151_s4 }
 0x465   :  { %v496_v28 = vpop.permute.xlu0 %495 }
 0x466   :  { %989 = vmatprep.mubr.msk.f32.mxu1 %vm213_vm2, %v496_v28 }
 0x46a   :  { %v498_v29 = vpop.permute.xlu0 %497 }
 0x46b   :  { %v702_v30 = vpop.permute.xlu1 %701  ;;  %990 = vmatmul.mubr.msk.f32.vlgmr.msra.gmra.mrb[4].mxu1 %vm213_vm2, %v498_v29 }
 0x46c   :  { %1008 = vmatprep.mubr.msk.f32.mxu0 %vm213_vm2, %v702_v30 }
 0x46f   :  { %v704_v36 = vpop.permute.xlu1 %703 }
 0x470   :  { %1009 = vmatmul.mubr.msk.f32.vlgmr.msra.gmra.mrb[6].mxu0 %vm213_vm2, %v704_v36 }
 0x53e   :  { %v991_v31 = vpop.f32.mrb[4].mxu1 }
 0x53f   :  { %v569_v32 = vpop.f32.mrb[5].mxu1  ;;  %1130 = vrcp.f32 %v991_v31 }
 0x540   :  { %1132 = vrcp.f32 %v569_v32 }
 0x543   :  { %v1010_v33 = vpop.f32.mrb[6].mxu0 }
 0x544   :  { %1134 = vrcp.f32 %v1010_v33  ;;  %v775_v34 = vpop.f32.mrb[7].mxu0 }
 0x545   :  { %1136 = vrcp.f32 %v775_v34 }
 0x549   :  { %v1131_v37 = vpop.eup %1130 }
 0x54a   :  { %v1133_v35 = vpop.eup %1132  ;;  %v581_v40 = vmul.f32 %v1131_v37, %v991_v31 }
 0x54b   :  { %v580_v42 = vmul.f32 %v1133_v35, %v569_v32 }
 0x54c   :  { %v583_v48 = vsub.f32 2.0, %v581_v40 }
 0x54d   :  { %v582_v50 = vsub.f32 2.0, %v580_v42 }
 0x54e   :  { %v1135_v38 = vpop.eup %1134  ;;  %v585_v52 = vmul.f32 %v1131_v37, %v583_v48 }
 0x54f   :  { %v1137_v39 = vpop.eup %1136  ;;  %v787_v41 = vmul.f32 %v1135_v38, %v1010_v33  ;;  %v584_v53 = vmul.f32 %v1133_v35, %v582_v50 }
 0x550   :  { %v786_v45 = vmul.f32 %v1137_v39, %v775_v34 }
 0x551   :  { %v789_v46 = vsub.f32 2.0, %v787_v41 }
 0x552   :  { %v788_v47 = vsub.f32 2.0, %v786_v45 }
 0x553   :  { %v791_v49 = vmul.f32 %v1135_v38, %v789_v46 }
 0x554   :  { %v790_v51 = vmul.f32 %v1137_v39, %v788_v47 }
 0x555   :  { %796 = vrot.lane.b32.xlu1 %v791_v49, %s1151_s4 }
 0x556   :  { %794 = vrot.lane.b32.xlu0 %v790_v51, %s1151_s4 }
 0x559   :  { %590 = vrot.lane.b32.xlu1 %v585_v52, %s1151_s4 }
 0x55a   :  { %588 = vrot.lane.b32.xlu0 %v584_v53, %s1151_s4 }
 0x55d   :  { %806 = vrot.lane.b32.xlu1 %v1309_v43, %s1151_s4  ;;  %v1425_v43 = vld [vmem:[%s1471_s6] sm:$0xff] }
 0x55e   :  { %804 = vrot.lane.b32.xlu0 %v1311_v44, %s1151_s4 }
 0x561   :  { %620 = vrot.lane.b32.xlu1 %v1218_v7, %s1151_s4  ;;  %v1439_v7 = vld [vmem:[%s1471_s6 + $0x10] sm:$0xff] }
 0x562   :  { %618 = vrot.lane.b32.xlu0 %v1211_v5, %s1151_s4  ;;  %v1434_v5 = vld [vmem:[%s1471_s6 + $0x18] sm:$0xff] }
 0x565   :  { %826 = vrot.lane.b32.xlu1 %v1232_v9, %s1151_s4  ;;  %v599_v9 = vpop.permute.xlu0 %598 }
 0x566   :  { %824 = vrot.lane.b32.xlu0 %v1223_v8, %s1151_s4  ;;  %v601_v8 = vpop.permute.xlu1 %600 }
 0x569   :  { %634 = vrot.lane.b32.xlu1 %v1420_v54, %s1151_s4 }
 0x56a   :  { %632 = vrot.lane.b32.xlu0 %v1425_v43, %s1151_s4 }
 0x56d   :  { %840 = vrot.lane.b32.xlu1 %v1434_v5, %s1151_s4 }
 0x56e   :  { %838 = vrot.lane.b32.xlu0 %v1439_v7, %s1151_s4 }
 0x5c7   :  { %v797_v44 = vpop.permute.xlu1 %796 }
 0x5c8   :  { %v795_v55 = vpop.permute.xlu0 %794  ;;  %v801_v60 = vmul.f32 %v1010_v33, %v797_v44 }
 0x5c9   :  { %v800_v62 = vmul.f32 %v795_v55, %v775_v34 }
 0x5cb   :  { %v591_v56 = vpop.permute.xlu1 %590 }
 0x5cc   :  { %v595_v57 = vmul.f32 %v991_v31, %v591_v56  ;;  %v589_v58 = vpop.permute.xlu0 %588 }
 0x5cd   :  { %v594_v59 = vmul.f32 %v589_v58, %v569_v32 }
 0x5ce   :  { %v605_v61 = vadd.f32 %v601_v8, %v595_v57 }
 0x5cf   :  { %v604_v63 = vadd.f32 %v599_v9, %v594_v59  ;;  %v807_v0 = vpop.permute.xlu1 %806 }
 0x5d0   :  { %v609_v1 = vmin.f32 %v605_v61, 0.0  ;;  %v811_v2 = vadd.f32 %v807_v0, %v801_v60  ;;  %v805_v3 = vpop.permute.xlu0 %804  ;;  %vm607_vm11 = vcmp.gt.f32.partialorder %v605_v61, 0.0 }
 0x5d1   :  { %v608_v4 = vmin.f32 %v604_v63, 0.0  ;;  %v810_v6 = vadd.f32 %v805_v3, %v800_v62  ;;  %vm606_vm12 = vcmp.gt.f32.partialorder %v604_v63, 0.0 }
 0x5d2   :  { %v612_v10 = vmul.f32 1.442695, %v609_v1  ;;  %v815_v11 = vmin.f32 %v811_v2, 0.0  ;;  %vm813_vm13 = vcmp.gt.f32.partialorder %v811_v2, 0.0 }
 0x5d3   :  { %v610_v14 = vmul.f32 1.442695, %v608_v4  ;;  %v814_v15 = vmin.f32 %v810_v6, 0.0  ;;  %v621_v18 = vpop.permute.xlu1 %620  ;;  %vm812_vm14 = vcmp.gt.f32.partialorder %v810_v6, 0.0 }
 0x5d4   :  { %1138 = vpow2.f32 %v612_v10  ;;  %v818_v16 = vmul.f32 1.442695, %v815_v11  ;;  %v619_v19 = vpop.permute.xlu0 %618 }
 0x5d5   :  { %1140 = vpow2.f32 %v610_v14  ;;  %v816_v17 = vmul.f32 1.442695, %v814_v15 }
 0x5d6   :  { %1142 = vpow2.f32 %v818_v16 }
 0x5d7   :  { %1144 = vpow2.f32 %v816_v17  ;;  %v827_v20 = vpop.permute.xlu1 %826 }
 0x5d8   :  { %v825_v21 = vpop.permute.xlu0 %824 }
 0x5db   :  { %v635_v28 = vpop.permute.xlu1 %634 }
 0x5dc   :  { %v633_v31 = vpop.permute.xlu0 %632 }
 0x5de   :  { %v1139_v22 = vpop.eup %1138 }
 0x5df   :  { %v1141_v23 = vpop.eup %1140  ;;  %v876_v24 = vadd.f32 -1.0, %v1139_v22  ;;  %v841_v46 = vpop.permute.xlu1 %840 }
 0x5e0   :  { %v1143_v25 = vpop.eup %1142  ;;  %v875_v12 = vadd.f32 -1.0, %v1141_v23  ;;  %v839_v49 = vpop.permute.xlu0 %838 }
 0x5e1   :  { %v1145_v13 = vpop.eup %1144  ;;  %v617_v26 = vsel %vm607_vm11, %v605_v61, %v876_v24  ;;  %v880_v27 = vadd.f32 -1.0, %v1143_v25 }
 0x5e2   :  { %v625_v29 = vadd.f32 %v621_v18, %v617_v26  ;;  %v616_v30 = vsel %vm606_vm12, %v604_v63, %v875_v12  ;;  %v879_v36 = vadd.f32 -1.0, %v1145_v13 }
 0x5e3   :  { %v624_v32 = vadd.f32 %v619_v19, %v616_v30  ;;  %v823_v33 = vsel %vm813_vm13, %v811_v2, %v880_v27 }
 0x5e4   :  { %v627_v34 = vmax.f32 %v625_v29, 0.0  ;;  %v831_v37 = vadd.f32 %v827_v20, %v823_v33  ;;  %v822_v35 = vsel %vm812_vm14, %v810_v6, %v879_v36 }
 0x5e5   :  { %v626_v38 = vmax.f32 %v624_v32, 0.0  ;;  %v830_v39 = vadd.f32 %v825_v21, %v822_v35 }
 0x5e6   :  { %v833_v40 = vmax.f32 %v831_v37, 0.0  ;;  %v629_v41 = vmul.f32 %v627_v34, %v1420_v54 }
 0x5e7   :  { %v832_v42 = vmax.f32 %v830_v39, 0.0  ;;  %v628_v45 = vmul.f32 %v626_v38, %v1425_v43 }
 0x5e8   :  { %v639_v47 = vadd.f32 %v635_v28, %v629_v41  ;;  %v835_v48 = vmul.f32 %v833_v40, %v1434_v5 }
 0x5e9   :  { %v638_v50 = vadd.f32 %v633_v31, %v628_v45  ;;  %v834_v51 = vmul.f32 %v832_v42, %v1439_v7 }
 0x5ea   :  { %847 = vst.msk [vmem:[%s1472_s7 + $0x8] sm:$0xff] %vm401_vm4, %v639_v47  ;;  %v845_v52 = vadd.f32 %v841_v46, %v835_v48 }
 0x5eb   :  { %846 = vst.msk [vmem:[%s1472_s7] sm:$0xff] %vm401_vm4, %v638_v50  ;;  %v844_v53 = vadd.f32 %v839_v49, %v834_v51 }
 0x5ec   :  { %849 = vst.msk [vmem:[%s1472_s7 + $0x18] sm:$0xff] %vm401_vm4, %v845_v52 }
 0x5ed   :  { %848 = vst.msk [vmem:[%s1472_s7 + $0x10] sm:$0xff] %vm401_vm4, %v844_v53 }

</bundles_post_ra>
